<compile_context>
chip_gen: v5e
topology: v5e:2x2
jax: 0.10.0
libtpu: 0.0.40
codegen_flags: <defaults>
</compile_context>

<pallas_src>
import math

import jax
import jax.numpy as jnp
from jax.experimental import pallas as pl
from jax.experimental.pallas import tpu as pltpu


def _v_update_kernel(c_ref, u_ref, v_ref, k1_ref, x_ref):
    # c = K*K / rho, prefetched into SMEM.
    c = c_ref[0]
    k1 = k1_ref[...]
    correction = jnp.where(k1 == 0.0, c, jnp.float32(0.0))
    x_ref[...] = (v_ref[...] - u_ref[...]) - correction


def v_update(u, v, K1, K, rho, *, lane=1024, tile_rows=256):
    """Pallas implementation of V_update.forward; returns x."""
    orig_shape = u.shape
    n = math.prod(orig_shape)

    u1 = u.reshape(-1).astype(jnp.float32)
    v1 = v.reshape(-1).astype(jnp.float32)
    k11 = K1.reshape(-1).astype(jnp.float32)

    # Pad to a multiple of 8*lane elements so the slab is (R, lane) with R % 8 == 0.
    row_quant = 8 * lane
    n_pad = (-n) % row_quant
    if n_pad:
        u1 = jnp.pad(u1, (0, n_pad))
        v1 = jnp.pad(v1, (0, n_pad))
        # Pad K1 with a non-zero value so the padded region takes the cheap branch.
        k11 = jnp.pad(k11, (0, n_pad), constant_values=1.0)
    n_total = n + n_pad
    R = n_total // lane

    u2 = u1.reshape(R, lane)
    v2 = v1.reshape(R, lane)
    k12 = k11.reshape(R, lane)

    # Tile: (tr, lane) f32; tr is a multiple of 8 (R is a multiple of 8 by padding).
    tr = min(tile_rows, R)
    grid = (pl.cdiv(R, tr),)

    # Single SMEM scalar: K*K / rho.
    c_arr = jnp.asarray(
        [jnp.float32(K) * jnp.float32(K) / jnp.float32(rho)], dtype=jnp.float32
    )

    tile_spec_in = pl.BlockSpec((tr, lane), lambda i, c: (i, 0))
    tile_spec_out = pl.BlockSpec((tr, lane), lambda i, c: (i, 0))

    out = pl.pallas_call(
        _v_update_kernel,
        out_shape=jax.ShapeDtypeStruct((R, lane), jnp.float32),
        grid_spec=pltpu.PrefetchScalarGridSpec(
            num_scalar_prefetch=1,
            grid=grid,
            in_specs=[tile_spec_in, tile_spec_in, tile_spec_in],
            out_specs=tile_spec_out,
        ),
        compiler_params=pltpu.CompilerParams(
            dimension_semantics=("parallel",),
        ),
        cost_estimate=pl.CostEstimate(
            flops=3 * n_total,
            transcendentals=0,
            bytes_accessed=4 * n_total * 4,  # 3 reads + 1 write, f32
        ),
    )(c_arr, u2, v2, k12)

    return out.reshape(-1)[:n].reshape(orig_shape)


def _reference(u, v, K1, K, rho):
    # Follows the original numpy formula (K0 = K^2 - K1; x[K1==0] -= K0/rho).
    vtilde = v - u
    K0 = K * K - K1
    return jnp.where(K1 == 0.0, vtilde - K0 / rho, vtilde)


if __name__ == "__main__":
    key = jax.random.PRNGKey(0)
    k_u, k_v, k_k1 = jax.random.split(key, 3)

    B, C, H, W = 2, 4, 16, 16            # small NCHW shapes
    K = 8.0
    rho = 1.5

    u = jax.random.normal(k_u, (B, C, H, W), dtype=jnp.float32)
    v = jax.random.normal(k_v, (B, C, H, W), dtype=jnp.float32)
    # K1: non-negative integer-valued photon counts, with some zeros
    K1 = jax.random.randint(k_k1, (B, C, H, W), 0, 4).astype(jnp.float32)

    x = v_update(u, v, K1, K, rho)
    x = jax.block_until_ready(x)

    x_ref = _reference(u, v, K1, K, rho)
    assert jnp.allclose(x, x_ref, atol=1e-6, rtol=1e-6), "mismatch vs reference"

    print("KERNEL_OK")
</pallas_src>

<mosaic_0001>
module attributes {stable_mosaic.version = 11 : i64} {
  func.func @_v_update_kernel(%arg0: i32, %arg1: memref<1xf32, #tpu.memory_space<smem>>, %arg2: memref<8x1024xf32, #tpu.memory_space<vmem>>, %arg3: memref<8x1024xf32, #tpu.memory_space<vmem>>, %arg4: memref<8x1024xf32, #tpu.memory_space<vmem>>, %arg5: memref<8x1024xf32, #tpu.memory_space<vmem>>) attributes {dimension_semantics = [#tpu.dimension_semantics<parallel>], iteration_bounds = array<i64: 1>, scalar_prefetch = 1 : i64, scratch_operands = 0 : i64, tpu.core_type = #tpu.core_type<tc>, window_params = [{transform_indices = @transform_0, window_bounds = array<i64: 8, 1024>}, {transform_indices = @transform_1, window_bounds = array<i64: 8, 1024>}, {transform_indices = @transform_2, window_bounds = array<i64: 8, 1024>}, {transform_indices = @transform_3, window_bounds = array<i64: 8, 1024>}]} {
    %c0 = arith.constant 0 : index
    %0 = memref.load %arg1[%c0] : memref<1xf32, #tpu.memory_space<smem>>
    %c0_0 = arith.constant 0 : index
    %c0_1 = arith.constant 0 : index
    %1 = vector.load %arg4[%c0_0, %c0_1] : memref<8x1024xf32, #tpu.memory_space<vmem>>, vector<8x1024xf32>
    %cst = arith.constant 0.000000e+00 : f32
    %2 = vector.broadcast %cst : f32 to vector<8x1024xf32>
    %3 = arith.cmpf oeq, %1, %2 : vector<8x1024xf32>
    %cst_2 = arith.constant 0.000000e+00 : f32
    %4 = vector.broadcast %0 : f32 to vector<8x1024xf32>
    %5 = vector.broadcast %cst_2 : f32 to vector<8x1024xf32>
    %6 = arith.select %3, %4, %5 : vector<8x1024xi1>, vector<8x1024xf32>
    %c0_3 = arith.constant 0 : index
    %c0_4 = arith.constant 0 : index
    %7 = vector.load %arg3[%c0_3, %c0_4] : memref<8x1024xf32, #tpu.memory_space<vmem>>, vector<8x1024xf32>
    %c0_5 = arith.constant 0 : index
    %c0_6 = arith.constant 0 : index
    %8 = vector.load %arg2[%c0_5, %c0_6] : memref<8x1024xf32, #tpu.memory_space<vmem>>, vector<8x1024xf32>
    %9 = arith.subf %7, %8 : vector<8x1024xf32>
    %10 = arith.subf %9, %6 : vector<8x1024xf32>
    %c0_7 = arith.constant 0 : index
    %c0_8 = arith.constant 0 : index
    %11 = vector.load %arg5[%c0_7, %c0_8] : memref<8x1024xf32, #tpu.memory_space<vmem>>, vector<8x1024xf32>
    tpu.vector_store %arg5[%c0_7, %c0_8], %10 {strides = array<i32>} : memref<8x1024xf32, #tpu.memory_space<vmem>>, vector<8x1024xf32>,
    return
  }
  func.func @transform_0(%arg0: i32, %arg1: memref<1xf32, #tpu.memory_space<smem>>) -> (i32, i32) {
    %c0_i32 = arith.constant 0 : i32
    %c0_i32_0 = arith.constant 0 : i32
    return %arg0, %c0_i32 : i32, i32
  }
  func.func @transform_1(%arg0: i32, %arg1: memref<1xf32, #tpu.memory_space<smem>>) -> (i32, i32) {
    %c0_i32 = arith.constant 0 : i32
    %c0_i32_0 = arith.constant 0 : i32
    return %arg0, %c0_i32 : i32, i32
  }
  func.func @transform_2(%arg0: i32, %arg1: memref<1xf32, #tpu.memory_space<smem>>) -> (i32, i32) {
    %c0_i32 = arith.constant 0 : i32
    %c0_i32_0 = arith.constant 0 : i32
    return %arg0, %c0_i32 : i32, i32
  }
  func.func @transform_3(%arg0: i32, %arg1: memref<1xf32, #tpu.memory_space<smem>>) -> (i32, i32) {
    %c0_i32 = arith.constant 0 : i32
    %c0_i32_0 = arith.constant 0 : i32
    return %arg0, %c0_i32 : i32, i32
  }
}

</mosaic_0001>

<bundles_post_ra>
// kernel: tpu_custom_call.1
= control target key start
LH: loop header
LB: loop body
LE: loop exit
PB: predicated region body
PF: predicated region fallthrough
CT: control target
= control target key end

     0   :  { %10 = vsyncpa [#allocation5], 0  ;;  %s309_s0 = inlined_call_operand.<no memory space> [shape: f32[1], index: 0, kind: input, shape index: {}]   ;;  %s310_s1 = inlined_call_operand.hbm [shape: f32[8,1024], index: 1, kind: input, shape index: {}]   ;;  %s311_s2 = inlined_call_operand.hbm [shape: f32[8,1024], index: 2, kind: input, shape index: {}]   ;;  %s312_s3 = inlined_call_operand.hbm [shape: f32[8,1024], index: 3, kind: input, shape index: {}]   ;;  %s313_s4 = inlined_call_operand.hbm [shape: f32[8,1024], index: 4, kind: output, shape index: {}]  }
   0x1   :  { %11 = vsyncpa [#allocation8], 0  ;;  %s29_s17 = sshll.u32 %s311_s2, 4  ;;  %s30_s17 = int_to_ptr.hbm [resolvable:$true] %s29_s17 }
   0x2   :  { %12 = vsyncpa [#allocation6], 0  ;;  %s248_s18 = smov [#allocation7]   ;;  %s18_s22 = sshll.u32 %s310_s1, 4  ;;  %s19_s22 = int_to_ptr.hbm [resolvable:$true] %s18_s22 }
   0x3   :  { %s31_s19 = sshll.u32 %s248_s18, 4  ;;  %s249_s23 = smov [#allocation4]   ;;  %s32_s19 = int_to_ptr.vmem [resolvable:$true] %s31_s19 }
   0x4   :  { %34 = dma.hbm_to_vmem [thread:$0]  %s30_s17, 1024, %s32_s19, [#allocation8]  }
   0x5   :  { %s20_s24 = sshll.u32 %s249_s23, 4  ;;  %s40_s27 = sshll.u32 %s312_s3, 4  ;;  %s21_s24 = int_to_ptr.vmem [resolvable:$true] %s20_s24  ;;  %s41_s27 = int_to_ptr.hbm [resolvable:$true] %s40_s27 }
   0x6   :  { %23 = dma.hbm_to_vmem [thread:$0]  %s19_s22, 1024, %s21_s24, [#allocation5]  }
   0x7   :  { %s250_s2 = smov [#allocation9]  }
   0x8   :  { %s42_s28 = sshll.u32 %s250_s2, 4  ;;  %s43_s28 = int_to_ptr.vmem [resolvable:$true] %s42_s28 }
   0x9   :  { %45 = dma.hbm_to_vmem [thread:$0]  %s41_s27, 1024, %s43_s28, [#allocation8]  }
   0xa   :  { %242 = dma.done.wait [#allocation5], 1024  }
   0xb   :  { %243 = vsyncadd [#allocation5], 4294966272 }
   0xc   :  { %244 = dma.done.wait [#allocation8], 2048  }
   0xd   :  { %245 = vsyncadd [#allocation8], 4294965248  ;;  %v289_v0 = vstv %s309_s0  ;;  %v59_v1 = vld [vmem:[#allocation9] sm:$0xff]  ;;  %v60_v5 = vld [vmem:[#allocation9 + $0x8] sm:$0xff]  ;;  %s131_s30 = sshll.u32 %s313_s4, 4  ;;  %s251_s5 = smov [#allocation10]   ;;  %s132_s30 = int_to_ptr.hbm [resolvable:$true] %s131_s30 }
   0xe   :  { %v84_v2 = vld [vmem:[#allocation7] sm:$0xff]  ;;  %vm67_vm0 = vcmp.eq.f32.partialorder %v59_v1, 0.0  ;;  %v85_v6 = vld [vmem:[#allocation7 + $0x8] sm:$0xff]  ;;  %vm68_vm1 = vcmp.eq.f32.partialorder %v60_v5, 0.0  ;;  %v61_v10 = vld [vmem:[#allocation9 + $0x10] sm:$0xff]  ;;  %s297_s6 = sshll.u32 %s251_s5, 4  ;;  %s130_s6 = int_to_ptr.vmem [resolvable:$true] %s297_s6 }
   0xf   :  { %v92_v3 = vld [vmem:[#allocation4] sm:$0xff]  ;;  %v93_v7 = vld [vmem:[#allocation4 + $0x8] sm:$0xff]  ;;  %v76_v8 = vsel %vm67_vm0, %v289_v0, 0.0  ;;  %v86_v11 = vld [vmem:[#allocation7 + $0x10] sm:$0xff]  ;;  %v77_v14 = vsel %vm68_vm1, %v289_v0, 0.0  ;;  %vm69_vm2 = vcmp.eq.f32.partialorder %v61_v10, 0.0 }
  0x10   :  { %v100_v4 = vsub.f32 %v84_v2, %v92_v3  ;;  %v101_v9 = vsub.f32 %v85_v6, %v93_v7  ;;  %v94_v12 = vld [vmem:[#allocation4 + $0x10] sm:$0xff]  ;;  %v62_v16 = vld [vmem:[#allocation9 + $0x18] sm:$0xff]  ;;  %v78_v20 = vsel %vm69_vm2, %v289_v0, 0.0  ;;  %v63_v22 = vld [vmem:[#allocation9 + $0x20] sm:$0xff] }
  0x11   :  { %v102_v15 = vsub.f32 %v86_v11, %v94_v12  ;;  %v87_v17 = vld [vmem:[#allocation7 + $0x18] sm:$0xff]  ;;  %vm70_vm3 = vcmp.eq.f32.partialorder %v62_v16, 0.0  ;;  %v88_v23 = vld [vmem:[#allocation7 + $0x20] sm:$0xff]  ;;  %vm71_vm4 = vcmp.eq.f32.partialorder %v63_v22, 0.0  ;;  %v64_v28 = vld [vmem:[#allocation9 + $0x28] sm:$0xff] }
  0x12   :  { %v108_v13 = vsub.f32 %v100_v4, %v76_v8  ;;  %v95_v18 = vld [vmem:[#allocation4 + $0x18] sm:$0xff]  ;;  %v109_v19 = vsub.f32 %v101_v9, %v77_v14  ;;  %v96_v24 = vld [vmem:[#allocation4 + $0x20] sm:$0xff]  ;;  %v79_v26 = vsel %vm70_vm3, %v289_v0, 0.0  ;;  %v89_v29 = vld [vmem:[#allocation7 + $0x28] sm:$0xff]  ;;  %v80_v32 = vsel %vm71_vm4, %v289_v0, 0.0 }
  0x13   :  { %v103_v21 = vsub.f32 %v87_v17, %v95_v18  ;;  %v110_v25 = vsub.f32 %v102_v15, %v78_v20  ;;  %v104_v27 = vsub.f32 %v88_v23, %v96_v24  ;;  %v97_v30 = vld [vmem:[#allocation4 + $0x28] sm:$0xff]  ;;  %vm72_vm5 = vcmp.eq.f32.partialorder %v64_v28, 0.0  ;;  %v65_v34 = vld [vmem:[#allocation9 + $0x30] sm:$0xff]  ;;  %v66_v40 = vld [vmem:[#allocation9 + $0x38] sm:$0xff] }
  0x14   :  { %116 = vst [vmem:[#allocation10] sm:$0xff] %v108_v13  ;;  %v105_v33 = vsub.f32 %v89_v29, %v97_v30  ;;  %v90_v35 = vld [vmem:[#allocation7 + $0x30] sm:$0xff]  ;;  %v81_v38 = vsel %vm72_vm5, %v289_v0, 0.0  ;;  %vm73_vm6 = vcmp.eq.f32.partialorder %v65_v34, 0.0  ;;  %v91_v41 = vld [vmem:[#allocation7 + $0x38] sm:$0xff]  ;;  %vm74_vm7 = vcmp.eq.f32.partialorder %v66_v40, 0.0 }
  0x15   :  { %117 = vst [vmem:[#allocation10 + $0x8] sm:$0xff] %v109_v19  ;;  %v111_v31 = vsub.f32 %v103_v21, %v79_v26  ;;  %v98_v36 = vld [vmem:[#allocation4 + $0x30] sm:$0xff]  ;;  %v112_v37 = vsub.f32 %v104_v27, %v80_v32  ;;  %v99_v42 = vld [vmem:[#allocation4 + $0x38] sm:$0xff]  ;;  %v82_v44 = vsel %vm73_vm6, %v289_v0, 0.0  ;;  %v83_v47 = vsel %vm74_vm7, %v289_v0, 0.0 }
  0x16   :  { %118 = vst [vmem:[#allocation10 + $0x10] sm:$0xff] %v110_v25  ;;  %v106_v39 = vsub.f32 %v90_v35, %v98_v36  ;;  %v113_v43 = vsub.f32 %v105_v33, %v81_v38  ;;  %v107_v45 = vsub.f32 %v91_v41, %v99_v42 }
  0x17   :  { %119 = vst [vmem:[#allocation10 + $0x18] sm:$0xff] %v111_v31 }
  0x18   :  { %120 = vst [vmem:[#allocation10 + $0x20] sm:$0xff] %v112_v37  ;;  %v114_v46 = vsub.f32 %v106_v39, %v82_v44  ;;  %v115_v48 = vsub.f32 %v107_v45, %v83_v47 }
  0x19   :  { %121 = vst [vmem:[#allocation10 + $0x28] sm:$0xff] %v113_v43 }
  0x1a   :  { %122 = vst [vmem:[#allocation10 + $0x30] sm:$0xff] %v114_v46 }
  0x1b   :  { %123 = vst [vmem:[#allocation10 + $0x38] sm:$0xff] %v115_v48 }
  0x1c   :  { %134 = dma.vmem_to_hbm [thread:$0]  %s130_s6, 1024, %s132_s30, [#allocation6]  }
  0x1d   :  { %246 = dma.done.wait [#allocation6], 1024  }
  0x1e   :  { %247 = vsyncadd [#allocation6], 4294966272 }
  0x1f   :  { %139 = vsyncpa [#allocation5], 1 }
  0x20   :  { %140 = vsyncpa [#allocation8], 1 }
  0x21   :  { %141 = vsyncpa [#allocation6], 1 }

</bundles_post_ra>
